<compile_context>
chip_gen: v7x
topology: tpu7x:2x2x1
jax: 0.10.0
libtpu: 0.0.40
codegen_flags: <defaults>
</compile_context>

<pallas_src>
import functools

import jax
import jax.numpy as jnp
from jax.experimental import pallas as pl
from jax.experimental.pallas import tpu as pltpu

_NEG = -1.0e30  # "minus infinity" for masked class lanes (inert under logsumexp)


# ----------------------------- Pallas kernel --------------------------------
def _ce_partial_kernel(labels_ref, logits_ref, psum_ref, *, n_rows, tile_rows,
                       num_classes):
    """Writes sum over this row tile of [logsumexp(x[r,:]) - x[r, y[r]]]."""
    x = logits_ref[...].astype(jnp.float32)                  # [TN, C] cast in-vreg
    y = labels_ref[...]                                      # [TN, 1] i32

    # Class-lane guard: the block spans the full logical class dim, so this is
    # a logical no-op, but it keeps physically padded lanes inert.
    cls = jax.lax.broadcasted_iota(jnp.int32, x.shape, 1)    # [TN, C]
    x = jnp.where(cls < num_classes, x, _NEG)

    # Numerically stable logsumexp along the lane (class) axis.
    m = jnp.max(x, axis=-1, keepdims=True)                   # [TN, 1]
    lse = m + jnp.log(jnp.sum(jnp.exp(x - m), axis=-1, keepdims=True))

    # Target logit via one-hot select (no gather on TPU).
    # TODO(synk): out-of-range / ignore-index labels (e.g. -100) are assumed
    # absent (as in the module's usage); they would silently give tgt = 0.
    tgt = jnp.sum(jnp.where(cls == y, x, 0.0), axis=-1, keepdims=True)

    per_row = lse - tgt                                      # [TN, 1]

    # Mask rows beyond N (garbage read by the partially-OOB last block).
    row = jax.lax.broadcasted_iota(jnp.int32, per_row.shape, 0)
    row = row + pl.program_id(0) * tile_rows
    per_row = jnp.where(row < n_rows, per_row, 0.0)

    # Lane-dense partial-sum output block (host reads lane [0, 0]).
    psum_ref[...] = jnp.broadcast_to(jnp.sum(per_row), psum_ref.shape)


def _choose_row_tile(n, c, itemsize, target_bytes=4 << 20):
    """Rows per grid step: ~4 MiB logits block, multiple of 8, >=2 grid steps."""
    if n <= 8:
        return n                                  # single block; row dim == full dim
    max_rows = (n // 8) * 8                       # largest multiple of 8 <= n
    tn = (target_bytes // max(1, c * itemsize)) // 8 * 8
    tn = max(8, min(tn, max_rows))
    if max_rows >= 16:                            # keep >= 2 steps for v7x's 2 TCs
        half = (((n + 1) // 2) + 7) // 8 * 8
        tn = min(tn, max(8, half))
    return tn


def _ce_partial_sums(logits, labels2d, tn):
    n, c = logits.shape
    grid = pl.cdiv(n, tn)
    kernel = functools.partial(_ce_partial_kernel, n_rows=n, tile_rows=tn,
                               num_classes=c)
    return pl.pallas_call(
        kernel,
        out_shape=jax.ShapeDtypeStruct((grid, 8, 128), jnp.float32),
        grid_spec=pltpu.PrefetchScalarGridSpec(
            num_scalar_prefetch=0,
            grid=(grid,),
            in_specs=[
                pl.BlockSpec((tn, 1), lambda i: (i, 0)),   # labels [TN,1] i32
                pl.BlockSpec((tn, c), lambda i: (i, 0)),   # logits [TN,C] native dtype
            ],
            out_specs=pl.BlockSpec((1, 8, 128), lambda i: (i, 0, 0)),
        ),
        compiler_params=pltpu.CompilerParams(
            dimension_semantics=("parallel",),
            vmem_limit_bytes=32 * 1024 * 1024,
        ),
    )(labels2d, logits)


# ------------------------------- JAX glue ------------------------------------
def _is_on(epoch, start_epoch, end_epoch):
    # Host-side replica of _ElementaryLoss.is_on (Python ints / None only).
    if end_epoch == -1:
        end_epoch = None
    if start_epoch is None and end_epoch is None:
        return True
    if isinstance(start_epoch, int) and isinstance(end_epoch, int):
        return start_epoch <= epoch <= end_epoch
    if start_epoch is None and isinstance(end_epoch, int):
        return epoch <= end_epoch
    if isinstance(start_epoch, int) and end_epoch is None:
        return epoch >= start_epoch
    return False


def cl_loss(cl_logits, glabel, *, lambda_=1.0, epoch=0,
            start_epoch=None, end_epoch=None):
    """Forward pass of ClLoss. Returns a rank-0 f32 loss (torch CE * lambda_)."""
    # TODO(synk): ELB bookkeeping / update_t() from _ElementaryLoss is training
    # loop state with no kernel equivalent; epoch gating is handled host-side.
    if not _is_on(epoch, start_epoch, end_epoch):
        return jnp.zeros((), jnp.float32)   # torch's _zero is shape (1,); keep rank-0

    n, c = cl_logits.shape
    labels2d = glabel.astype(jnp.int32).reshape(n, 1)
    tn = _choose_row_tile(n, c, jnp.dtype(cl_logits.dtype).itemsize)
    partials = _ce_partial_sums(cl_logits, labels2d, tn)     # [grid, 8, 128]
    total = jnp.sum(partials[:, 0, 0])
    return (total * (lambda_ / n)).astype(jnp.float32)


# Pure-JAX reference for sanity checking
def _reference(cl_logits, glabel, lambda_=1.0):
    logp = jax.nn.log_softmax(cl_logits.astype(jnp.float32), axis=-1)
    nll = -jnp.take_along_axis(logp, glabel[:, None].astype(jnp.int32), axis=-1)[:, 0]
    return jnp.mean(nll) * lambda_


if __name__ == "__main__":
    key = jax.random.PRNGKey(0)
    k1, k2, k3, k4, k5, k6 = jax.random.split(key, 6)

    # Case 1: small shapes implied by the module (batch=2, 4 classes), f32.
    logits_a = jax.random.normal(k1, (2, 4), dtype=jnp.float32)
    labels_a = jax.random.randint(k2, (2,), 0, 4, dtype=jnp.int32)
    loss_a = jax.block_until_ready(cl_loss(logits_a, labels_a, lambda_=1.0))
    ref_a = jax.block_until_ready(_reference(logits_a, labels_a, lambda_=1.0))
    assert loss_a.shape == ()
    assert jnp.allclose(loss_a, ref_a, rtol=1e-5, atol=1e-5), (loss_a, ref_a)

    # Case 2: multi-block grid + non-128-aligned class dim, f32.
    logits_b = jax.random.normal(k3, (10, 200), dtype=jnp.float32) * 3.0
    labels_b = jax.random.randint(k4, (10,), 0, 200, dtype=jnp.int32)
    loss_b = jax.block_until_ready(cl_loss(logits_b, labels_b, lambda_=0.5))
    ref_b = jax.block_until_ready(_reference(logits_b, labels_b, lambda_=0.5))
    assert jnp.allclose(loss_b, ref_b, rtol=1e-5, atol=1e-5), (loss_b, ref_b)

    # Case 3: bf16 input (in-kernel cast), partial last row block, odd shapes.
    logits_c = (jax.random.normal(k5, (37, 50), dtype=jnp.float32) * 2.0
                ).astype(jnp.bfloat16)
    labels_c = jax.random.randint(k6, (37,), 0, 50, dtype=jnp.int32)
    loss_c = jax.block_until_ready(cl_loss(logits_c, labels_c, lambda_=2.0))
    ref_c = jax.block_until_ready(_reference(logits_c, labels_c, lambda_=2.0))
    assert jnp.allclose(loss_c, ref_c, rtol=1e-5, atol=1e-5), (loss_c, ref_c)

    print("KERNEL_OK")
</pallas_src>

<mosaic_0001>
module attributes {stable_mosaic.version = 11 : i64} {
  func.func @_ce_partial_kernel(%arg0: i32, %arg1: memref<2x1xi32, #tpu.memory_space<vmem>>, %arg2: memref<2x4xf32, #tpu.memory_space<vmem>>, %arg3: memref<1x8x128xf32, #tpu.memory_space<vmem>>) attributes {dimension_semantics = [#tpu.dimension_semantics<parallel>], iteration_bounds = array<i64: 1>, scalar_prefetch = 0 : i64, scratch_operands = 0 : i64, tpu.core_type = #tpu.core_type<tc>, window_params = [{transform_indices = @transform_0, window_bounds = array<i64: 2, 1>}, {transform_indices = @transform_1, window_bounds = array<i64: 2, 4>}, {transform_indices = @transform_2, window_bounds = array<i64: 1, 8, 128>}]} {
    %c0 = arith.constant 0 : index
    %c0_0 = arith.constant 0 : index
    %0 = vector.load %arg2[%c0, %c0_0] : memref<2x4xf32, #tpu.memory_space<vmem>>, vector<2x4xf32>
    %c0_1 = arith.constant 0 : index
    %c0_2 = arith.constant 0 : index
    %1 = vector.load %arg1[%c0_1, %c0_2] : memref<2x1xi32, #tpu.memory_space<vmem>>, vector<2x1xi32>
    %2 = tpu.iota {dimensions = array<i32: 1>} : vector<2x4xi32>
    %c4_i32 = arith.constant 4 : i32
    %3 = vector.broadcast %c4_i32 : i32 to vector<2x4xi32>
    %4 = arith.cmpi slt, %2, %3 : vector<2x4xi32>
    %cst = arith.constant -1.000000e+30 : f32
    %5 = vector.broadcast %cst : f32 to vector<2x4xf32>
    %6 = arith.select %4, %0, %5 : vector<2x4xi1>, vector<2x4xf32>
    %cst_3 = arith.constant dense<0xFF800000> : vector<2xf32>
    %7 = vector.multi_reduction <maximumf>, %6, %cst_3 [1] : vector<2x4xf32> to vector<2xf32>
    %8 = vector.shape_cast %7 : vector<2xf32> to vector<2x1xf32>
    %9 = vector.broadcast %8 : vector<2x1xf32> to vector<2x4xf32>
    %10 = arith.subf %6, %9 : vector<2x4xf32>
    %11 = math.exp %10 : vector<2x4xf32>
    %cst_4 = arith.constant dense<0.000000e+00> : vector<2xf32>
    %12 = vector.multi_reduction <add>, %11, %cst_4 [1] : vector<2x4xf32> to vector<2xf32>
    %13 = vector.shape_cast %12 : vector<2xf32> to vector<2x1xf32>
    %14 = math.log %13 : vector<2x1xf32>
    %15 = arith.addf %8, %14 : vector<2x1xf32>
    %16 = vector.broadcast %1 : vector<2x1xi32> to vector<2x4xi32>
    %17 = arith.cmpi eq, %2, %16 : vector<2x4xi32>
    %cst_5 = arith.constant 0.000000e+00 : f32
    %18 = vector.broadcast %cst_5 : f32 to vector<2x4xf32>
    %19 = arith.select %17, %6, %18 : vector<2x4xi1>, vector<2x4xf32>
    %cst_6 = arith.constant dense<0.000000e+00> : vector<2xf32>
    %20 = vector.multi_reduction <add>, %19, %cst_6 [1] : vector<2x4xf32> to vector<2xf32>
    %21 = vector.shape_cast %20 : vector<2xf32> to vector<2x1xf32>
    %22 = arith.subf %15, %21 : vector<2x1xf32>
    %23 = tpu.iota {dimensions = array<i32: 0>} : vector<2x1xi32>
    %c2_i32 = arith.constant 2 : i32
    %24 = arith.muli %arg0, %c2_i32 : i32
    %25 = vector.broadcast %24 : i32 to vector<2x1xi32>
    %26 = arith.addi %23, %25 : vector<2x1xi32>
    %c2_i32_7 = arith.constant 2 : i32
    %27 = vector.broadcast %c2_i32_7 : i32 to vector<2x1xi32>
    %28 = arith.cmpi slt, %26, %27 : vector<2x1xi32>
    %cst_8 = arith.constant 0.000000e+00 : f32
    %29 = vector.broadcast %cst_8 : f32 to vector<2x1xf32>
    %30 = arith.select %28, %22, %29 : vector<2x1xi1>, vector<2x1xf32>
    %31 = vector.shape_cast %30 : vector<2x1xf32> to vector<1x2x1xf32>
    %cst_9 = arith.constant dense<0.000000e+00> : vector<1xf32>
    %32 = vector.multi_reduction <add>, %31, %cst_9 [1, 2] : vector<1x2x1xf32> to vector<1xf32>
    %33 = vector.shape_cast %32 : vector<1xf32> to vector<1x1x1xf32>
    %34 = vector.extract %33[0, 0, 0] : f32 from vector<1x1x1xf32>
    %35 = vector.broadcast %34 : f32 to vector<1x8x128xf32>
    %c0_10 = arith.constant 0 : index
    %c0_11 = arith.constant 0 : index
    %c0_12 = arith.constant 0 : index
    %36 = vector.load %arg3[%c0_10, %c0_11, %c0_12] : memref<1x8x128xf32, #tpu.memory_space<vmem>>, vector<1x8x128xf32>
    tpu.vector_store %arg3[%c0_10, %c0_11, %c0_12], %35 {strides = array<i32>} : memref<1x8x128xf32, #tpu.memory_space<vmem>>, vector<1x8x128xf32>,
    return
  }
  func.func @transform_0(%arg0: i32) -> (i32, i32) {
    %c0_i32 = arith.constant 0 : i32
    %c0_i32_0 = arith.constant 0 : i32
    return %arg0, %c0_i32 : i32, i32
  }
  func.func @transform_1(%arg0: i32) -> (i32, i32) {
    %c0_i32 = arith.constant 0 : i32
    %c0_i32_0 = arith.constant 0 : i32
    return %arg0, %c0_i32 : i32, i32
  }
  func.func @transform_2(%arg0: i32) -> (i32, i32, i32) {
    %c0_i32 = arith.constant 0 : i32
    %c0_i32_0 = arith.constant 0 : i32
    %c0_i32_1 = arith.constant 0 : i32
    return %arg0, %c0_i32, %c0_i32_0 : i32, i32, i32
  }
}

</mosaic_0001>

<bundles_post_ra>
// kernel: tpu_custom_call.1
= control target key start
LH: loop header
LB: loop body
LE: loop exit
PB: predicated region body
PF: predicated region fallthrough
CT: control target
= control target key end

     0   :  { %v14_v0 = vlaneseq  ;;  %v107_v1 = vmov 0   ;;  %s145_s0 = inlined_call_operand.vmem [shape: s32[2,1], index: 0, kind: input, shape index: {}]   ;;  %s146_s1 = inlined_call_operand.vmem [shape: f32[2,4], index: 1, kind: input, shape index: {}]   ;;  %s147_s2 = inlined_call_operand.hbm [shape: f32[1,8,128], index: 2, kind: output, shape index: {}]  }
   0x1   :  { %78 = vset.pattern.permute.xlu0 %v107_v1 }
   0x2   :  { %7 = vsyncpa [#allocation3], 0  ;;  %v12_v2 = vld [vmem:[%s146_s1] sm:$0x3]  ;;  %v15_v3 = vand.u32 127, %v14_v0  ;;  %vm18_vm0 = vcmask 25600  }
   0x3   :  { %v13_v6 = vld [vmem:[%s145_s0] sm:$0x3]  ;;  %v41_v17 = vshrl.u32 %v14_v0, 7  ;;  %vm47_vm4 = vcmask 1024   ;;  %s108_s0 = smov [#allocation2]  }
   0x4   :  { %vm16_vm1 = vcmp.lt.s32.totalorder %v15_v3, 4  ;;  %s66_s1 = sshll.u32 %s108_s0, 4  ;;  %s67_s1 = int_to_ptr.vmem [resolvable:$true] %s66_s1 }
   0x5   :  { %v17_v4 = vsel %vm16_vm1, %v12_v2, -1e+30  ;;  %vm45_vm3 = vcmp.lt.s32.totalorder %v41_v17, 2  ;;  %s83_s14 = scalar_lea.vmem %s67_s1, 128  ;;  %p88_p1 = scmp.lt.s32.totalorder %s67_s1, %s67_s1 }
   0x6   :  { %v19_v5 = vsel %vm18_vm0, %v17_v4, -inf  ;;  %p84_p0 = scmp.ne.s32.totalorder %s67_s1, %s83_s14  ;;  %p89_p2 = scmp.lt.s32.totalorder %s83_s14, %s83_s14 }
   0x7   :  { %20 = vmax.xlane.f32.xlu0 %v19_v5 }
   0x8   :  { %p90_p3 = por %p89_p2, %p88_p1 }
   0xa   :  { %p91_p4 = pnand %p90_p3, %p84_p0 }
  0x1d   :  { %32 = vperm.xlu0 %78, %v13_v6  }
  0x94   :  { %v21_v7 = vpop.xlane.xlu0 %20 }
  0x95   :  { %v22_v8 = vsub.f32 %v17_v4, %v21_v7 }
  0x97   :  { %v23_v9 = vmul.f32 1.442695, %v22_v8 }
  0x99   :  { %79 = vpow2.f32 %v23_v9 }
  0x9c   :  { %v33_v10 = vpop.permute.xlu0 %32 }
  0x9d   :  { %vm34_vm2 = vcmp.eq.s32.totalorder %v15_v3, %v33_v10 }
  0x9e   :  { %v35_v12 = vsel %vm34_vm2, %v17_v4, 0.0 }
  0x9f   :  { %v36_v14 = vsel %vm18_vm0, %v35_v12, 0.0 }
  0xa3   :  { %v80_v11 = vpop.eup %79 }
  0xa4   :  { %v25_v13 = vsel %vm18_vm0, %v80_v11, 0.0 }
  0xa5   :  { %26 = vadd.xlane.f32.xlu1 %v25_v13 }
  0xa9   :  { %37 = vadd.xlane.f32.xlu1 %v36_v14 }
 0x132   :  { %v27_v15 = vpop.xlane.xlu1 %26 }
 0x133   :  { %81 = vlog2.f32 %v27_v15 }
 0x136   :  { %v38_v19 = vpop.xlane.xlu1 %37 }
 0x13d   :  { %v82_v16 = vpop.eup %81 }
 0x13e   :  { %v29_v18 = vmul.f32 0.6931472, %v82_v16 }
 0x140   :  { %v30_v20 = vadd.f32 %v29_v18, %v21_v7 }
 0x142   :  { %v39_v21 = vsub.f32 %v30_v20, %v38_v19 }
 0x144   :  { %v46_v22 = vsel %vm45_vm3, %v39_v21, 0.0 }
 0x145   :  { %v48_v23 = vsel %vm47_vm4, %v46_v22, 0.0 }
 0x146   :  { %49 = vadd.xlane.f32.xlu1 %v48_v23 }
 0x1d3   :  { %v50_v24 = vpop.xlane.xlu1 %49 }
 0x1d4   :  { %v51_v25 = vrot.slane %v50_v24, 4 }
 0x1d6   :  { %v52_v26 = vadd.f32 %v51_v25, %v50_v24 }
 0x1d8   :  { %v53_v27 = vrot.slane %v52_v26, 2 }
 0x1da   :  { %v54_v28 = vadd.f32 %v53_v27, %v52_v26 }
 0x1dc   :  { %v55_v29 = vrot.slane %v54_v28, 1 }
 0x1de   :  { %v56_v30 = vadd.f32 %v55_v29, %v54_v28 }
 0x1e0   :  { %74 = vpush %v56_v30 }
 0x211   :  { %s75_s13 = spop %74 }
 0x212   :  { %v58_v31 = vstv %s75_s13 }
 0x213   :  { %59 = vst [vmem:[#allocation2] sm:$0xff] %v58_v31 }
 0x214   :  { %94 = shalt.err (!%p91_p4)
}
 0x215   :  { %s95_s17 = scalar_lea.hbm %s147_s2, 128 }
 0x216   :  { %p96_p5 = scmp.ne.s32.totalorder %s147_s2, %s95_s17  ;;  %p99_p6 = scmp.lt.u32.totalorder %s95_s17, %s147_s2 }
 0x218   :  { %p101_p7 = pnand %p99_p6, %p96_p5 }
 0x21a   :  { %104 = shalt.err (!%p101_p7)
}
 0x21b   :  { %69 = dma.vmem_to_hbm [thread:$0]  %s67_s1, 128, %s147_s2, [#allocation3]  }
 0x21c   :  { %105 = dma.done.wait [#allocation3], 128  }
 0x21d   :  { %106 = vsyncadd [#allocation3], 4294967168 }
 0x21e   :  { %73 = vsyncpa [#allocation3], 1 }

</bundles_post_ra>
